<compile_context>
chip_gen: v7x
topology: tpu7x:2x2x1
jax: 0.10.0
libtpu: 0.0.40
codegen_flags: <defaults>
</compile_context>

<pallas_src>
import jax
import jax.numpy as jnp
from jax.experimental import pallas as pl
from jax.experimental.pallas import tpu as pltpu


def _src_kernel(flag_ref, x_ref, o_ref):
    """Copy the tile through, or (flag set) reverse it along the lane axis.

    When the flag is set, the input BlockSpec has already fetched the *mirrored*
    lane-block, so a within-block reversal completes the global flip.
    """

    @pl.when(flag_ref[0] == 0)
    def _():
        o_ref[...] = x_ref[...]

    @pl.when(flag_ref[0] != 0)
    def _():
        x = x_ref[...]
        t = x.shape[-1]
        # Exchange (anti-identity) matrix built with iota on the VPU; the
        # permutation-matmul on the MXU is exact and keeps the VPU/HBM path free.
        row = jax.lax.broadcasted_iota(jnp.int32, (t, t), 0)
        col = jax.lax.broadcasted_iota(jnp.int32, (t, t), 1)
        exch = (row + col == t - 1).astype(x.dtype)
        o_ref[...] = jnp.dot(x, exch, preferred_element_type=jnp.float32).astype(
            o_ref.dtype
        )


def _pick_block(dim: int, target: int, quantum: int, min_block: int) -> int:
    """Largest divisor of `dim` that is a multiple of `quantum` and <= target.

    Falls back to the full dimension (always a legal block shape) instead of
    collapsing to pathologically tiny blocks.
    """
    if dim <= target:
        return dim
    cand = (target // quantum) * quantum
    while cand >= min_block:
        if dim % cand == 0:
            return cand
        cand -= quantum
    return dim


def reverse_complement_select(seq_1hot: jax.Array, reverse_bool) -> jax.Array:
    """out = flip(seq_1hot, axis=(1, 2)) if reverse_bool else seq_1hot (single kernel)."""
    B, L, A = seq_1hot.shape
    N = L * A
    itemsize = jnp.dtype(seq_1hot.dtype).itemsize

    # Free reshape: collapse the contiguous trailing (L, A) dims.
    x2d = seq_1hot.reshape(B, N)

    # Lane block: wide multiple of 128 for lane-dense, unmasked stores / big DMAs.
    # TODO(synk): very large N that is not a multiple of 128 falls back to a single
    # full-width block (exchange matrix grows to N x N); a masked/padded kernel path
    # would be needed for that case.
    bt = _pick_block(N, 512, 128, 128)
    br = _pick_block(B, 256, 8, 64)
    nbr, nbc = B // br, N // bt

    flag = jnp.asarray(reverse_bool, dtype=jnp.int32).reshape(1)

    out2d = pl.pallas_call(
        _src_kernel,
        out_shape=jax.ShapeDtypeStruct((B, N), seq_1hot.dtype),
        grid_spec=pltpu.PrefetchScalarGridSpec(
            num_scalar_prefetch=1,
            grid=(nbr, nbc),
            in_specs=[
                pl.BlockSpec(
                    (br, bt),
                    # Mirror the lane-block index when reversing; identity otherwise.
                    lambda i, j, flag_ref: (
                        i,
                        jnp.where(flag_ref[0] != 0, nbc - 1 - j, j),
                    ),
                )
            ],
            out_specs=pl.BlockSpec((br, bt), lambda i, j, flag_ref: (i, j)),
        ),
        compiler_params=pltpu.CompilerParams(
            dimension_semantics=("parallel", "parallel"),
        ),
        cost_estimate=pl.CostEstimate(
            flops=2 * B * N * bt,          # worst case (reverse branch taken)
            transcendentals=0,
            bytes_accessed=2 * B * N * itemsize,
        ),
    )(flag, x2d)

    return out2d.reshape(B, L, A)


def stochastic_reverse_complement(seq_1hot: jax.Array, *, key=None, training: bool = True):
    """JAX/Pallas equivalent of StochasticReverseComplement.forward."""
    if not training:
        return seq_1hot, jnp.zeros((), dtype=jnp.bool_)
    if key is None:
        raise ValueError("training=True requires a PRNG key")
    # One Bernoulli(0.5) draw per forward call (== torch.rand(1) > 0.5), shared by
    # every tile of every example via scalar prefetch.
    reverse_bool = jax.random.bernoulli(key, 0.5)
    out = reverse_complement_select(seq_1hot, reverse_bool)
    return out, reverse_bool


def _reference(x, rev):
    rc = jnp.flip(x, axis=(1, 2))  # channel complement (A<->T, C<->G) + sequence reverse
    return jnp.where(rev, rc, x)


if __name__ == "__main__":
    key = jax.random.PRNGKey(0)
    k_data, k_rc = jax.random.split(key)

    # Small one-hot DNA batch: (batch=8, seq_len=256, alphabet=4).
    B, L, A = 8, 256, 4
    base_ids = jax.random.randint(k_data, (B, L), 0, A)
    seq_1hot = jax.nn.one_hot(base_ids, A, dtype=jnp.float32)

    # Exercise both kernel branches deterministically.
    for rev in (jnp.asarray(False), jnp.asarray(True)):
        out = reverse_complement_select(seq_1hot, rev)
        jax.block_until_ready(out)
        assert out.shape == seq_1hot.shape and out.dtype == seq_1hot.dtype
        assert jnp.allclose(out, _reference(seq_1hot, rev), atol=1e-6)

    # Full module forward (stochastic draw, training path).
    out, reverse_bool = stochastic_reverse_complement(seq_1hot, key=k_rc, training=True)
    jax.block_until_ready(out)
    assert jnp.allclose(out, _reference(seq_1hot, reverse_bool), atol=1e-6)

    # Eval path: identity + False flag.
    out_eval, flag_eval = stochastic_reverse_complement(seq_1hot, training=False)
    assert jnp.array_equal(out_eval, seq_1hot) and not bool(flag_eval)

    print("KERNEL_OK")
</pallas_src>

<mosaic_0001>
module attributes {stable_mosaic.version = 11 : i64} {
  func.func @_src_kernel(%arg0: i32, %arg1: i32, %arg2: memref<1xi32, #tpu.memory_space<smem>>, %arg3: memref<8x512xf32, #tpu.memory_space<vmem>>, %arg4: memref<8x512xf32, #tpu.memory_space<vmem>>) attributes {dimension_semantics = [#tpu.dimension_semantics<parallel>, #tpu.dimension_semantics<parallel>], iteration_bounds = array<i64: 1, 2>, scalar_prefetch = 1 : i64, scratch_operands = 0 : i64, tpu.core_type = #tpu.core_type<tc>, window_params = [{transform_indices = @transform_0, window_bounds = array<i64: 8, 512>}, {transform_indices = @transform_1, window_bounds = array<i64: 8, 512>}]} {
    %c0 = arith.constant 0 : index
    %0 = memref.load %arg2[%c0] : memref<1xi32, #tpu.memory_space<smem>>
    %c0_i32 = arith.constant 0 : i32
    %1 = arith.cmpi eq, %0, %c0_i32 : i32
    %2 = arith.extui %1 : i1 to i32
    %c0_i32_0 = arith.constant 0 : i32
    %3 = arith.cmpi ne, %2, %c0_i32_0 : i32
    scf.if %3 {
      %c0_4 = arith.constant 0 : index
      %c0_5 = arith.constant 0 : index
      %8 = vector.load %arg3[%c0_4, %c0_5] : memref<8x512xf32, #tpu.memory_space<vmem>>, vector<8x512xf32>
      %c0_6 = arith.constant 0 : index
      %c0_7 = arith.constant 0 : index
      %9 = vector.load %arg4[%c0_6, %c0_7] : memref<8x512xf32, #tpu.memory_space<vmem>>, vector<8x512xf32>
      tpu.vector_store %arg4[%c0_6, %c0_7], %8 {strides = array<i32>} : memref<8x512xf32, #tpu.memory_space<vmem>>, vector<8x512xf32>,
    } else {
    }
    %c0_1 = arith.constant 0 : index
    %4 = memref.load %arg2[%c0_1] : memref<1xi32, #tpu.memory_space<smem>>
    %c0_i32_2 = arith.constant 0 : i32
    %5 = arith.cmpi ne, %4, %c0_i32_2 : i32
    %6 = arith.extui %5 : i1 to i32
    %c0_i32_3 = arith.constant 0 : i32
    %7 = arith.cmpi ne, %6, %c0_i32_3 : i32
    scf.if %7 {
      %c0_4 = arith.constant 0 : index
      %c0_5 = arith.constant 0 : index
      %8 = vector.load %arg3[%c0_4, %c0_5] : memref<8x512xf32, #tpu.memory_space<vmem>>, vector<8x512xf32>
      %9 = tpu.iota {dimensions = array<i32: 0>} : vector<512x512xi32>
      %10 = tpu.iota {dimensions = array<i32: 1>} : vector<512x512xi32>
      %11 = arith.addi %9, %10 : vector<512x512xi32>
      %c511_i32 = arith.constant 511 : i32
      %12 = vector.broadcast %c511_i32 : i32 to vector<512x512xi32>
      %13 = arith.cmpi eq, %11, %12 : vector<512x512xi32>
      %14 = arith.extui %13 : vector<512x512xi1> to vector<512x512xi32>
      %15 = arith.sitofp %14 : vector<512x512xi32> to vector<512x512xf32>
      %cst = arith.constant dense<0.000000e+00> : vector<8x512xf32>
      %16 = tpu.matmul %8, %15, %cst {dimension_numbers = #tpu.dot_dimension_numbers<[1], [0], [0], [1], [0, 0, 1, 1], [], []>} : vector<8x512xf32>, vector<512x512xf32>, vector<8x512xf32> -> vector<8x512xf32>
      %c0_6 = arith.constant 0 : index
      %c0_7 = arith.constant 0 : index
      %17 = vector.load %arg4[%c0_6, %c0_7] : memref<8x512xf32, #tpu.memory_space<vmem>>, vector<8x512xf32>
      tpu.vector_store %arg4[%c0_6, %c0_7], %16 {strides = array<i32>} : memref<8x512xf32, #tpu.memory_space<vmem>>, vector<8x512xf32>,
    } else {
    }
    return
  }
  func.func @transform_0(%arg0: i32, %arg1: i32, %arg2: memref<1xi32, #tpu.memory_space<smem>>) -> (i32, i32) {
    %c0 = arith.constant 0 : index
    %0 = memref.load %arg2[%c0] : memref<1xi32, #tpu.memory_space<smem>>
    %c0_i32 = arith.constant 0 : i32
    %1 = arith.cmpi ne, %0, %c0_i32 : i32
    %c1_i32 = arith.constant 1 : i32
    %2 = arith.subi %c1_i32, %arg1 : i32
    %3 = arith.select %1, %2, %arg1 : i32
    %c0_i32_0 = arith.constant 0 : i32
    return %arg0, %3 : i32, i32
  }
  func.func @transform_1(%arg0: i32, %arg1: i32, %arg2: memref<1xi32, #tpu.memory_space<smem>>) -> (i32, i32) {
    %c0_i32 = arith.constant 0 : i32
    return %arg0, %arg1 : i32, i32
  }
}

</mosaic_0001>

<bundles_post_ra>
// kernel: tpu_custom_call.1
= control target key start
LH: loop header
LB: loop body
LE: loop exit
PB: predicated region body
PF: predicated region fallthrough
CT: control target
= control target key end

     0   :  { %s2641_s0 = inlined_call_operand.<no memory space> [shape: s32[1], index: 0, kind: input, shape index: {}]   ;;  %s2642_s1 = inlined_call_operand.hbm [shape: f32[8,1024], index: 1, kind: input, shape index: {}]   ;;  %s2643_s2 = inlined_call_operand.hbm [shape: f32[8,1024], index: 2, kind: output, shape index: {}]  }
   0x1   :  { %7 = sst [smem:[#allocation3]] %s2641_s0 }
   0x2   :  { %8 = vsyncpa [#allocation5], 0 }
   0x3   :  { %10 = vsyncpa [#allocation5 + $0x1], 0 }
   0x4   :  { %11 = vsyncpa [#allocation6], 0 }
   0x5   :  { %13 = vsyncpa [#allocation6 + $0x1], 0  ;;  %s2173_s11 = smov 0   ;;  %s2175_s12 = smov 0  }
   0x6   :  { %s2177_s13 = smov 0   ;;  %s2179_s14 = smov 0  }
   0x7   :  { %s2181_s15 = smov 0   ;;  %s2183_s16 = smov 0  }
   0x8   :  { %s2185_s17 = smov 0   ;;  %s2187_s18 = smov 0  }
   0x9   :  { %s2189_s0 = smov 0  }
   0xa LB: > { %s1676_s19 = sadd.s32 4294967295, %s2148_s0   ;;  %s1677_s20 = sadd.s32 4294967294, %s2148_s0   ;;  %s2148_s0 = sphi %s2189_s0, %s19_s0   ;;  %s2144_s18 = sphi %s2187_s18, %s2668_s18   ;;  %s2140_s17 = sphi %s2185_s17, %s2667_s17   ;;  %s2136_s16 = sphi %s2183_s16, %s2666_s16   ;;  %s2132_s15 = sphi %s2181_s15, %s2665_s15   ;;  %s2128_s14 = sphi %s2179_s14, %s2664_s14   ;;  %s2124_s13 = sphi %s2177_s13, %s2663_s13   ;;  %s2120_s12 = sphi %s2175_s12, %s2662_s12   ;;  %s2116_s11 = sphi %s2173_s11, %s2661_s11  }
   0xb   : > { %s28_s21 = sadd.s32 1, %s2144_s18  ;;  %s35_s22 = sld [smem:[#allocation3]] }
   0xc   : > { %p29_p0 = scmp.ge.s32.totalorder %s28_s21, 2  ;;  %s37_s23 = ssub.s32 1, %s2144_s18 }
   0xd   : > { %s48_s24 = sadd.s32 1, %s2136_s16  ;;  %p55_p1 = scmp.ne.s32.totalorder %s2136_s16, %s2132_s15 }
   0xe   : > { %s2670_s21 = smov (%p29_p0, %s28_s21), 0  ;;  %p56_p2 = scmp.eq.s32.totalorder %s2148_s0, 0 }
   0xf   : > { %p61_p3 = scmp.ne.s32.totalorder %s2132_s15, %s2128_s14  ;;  %s41_s25 = ssub.s32 1, %s2670_s21 }
  0x10   : > { %p62_p4 = scmp.eq.s32.totalorder %s1676_s19, 0  ;;  %p2228_p6 = por %p56_p2, %p55_p1 }
  0x11   : > { %p36_p5 = scmp.ne.s32.totalorder %s35_s22, 0  ;;  %s72_s28 = ssub.s32 %s2144_s18, %s2670_s21 }
  0x12   : > { %p2232_p7 = por %p62_p4, %p61_p3  ;;  %p74_p8 = scmp.eq.s32.totalorder %s72_s28, 0 }
  0x13   : > { %s2672_s23 = smov (!%p36_p5, %s37_s23), %s2144_s18  ;;  %s2674_s25 = smov (!%p36_p5, %s41_s25), %s2670_s21 }
  0x14   : > { %s76_s29 = sadd.s32 1, %s2124_s13  ;;  %s44_s30 = ssub.s32 %s2672_s23, %s2674_s25 }
  0x15   : > { %p86_p9 = scmp.ne.s32.totalorder %s2124_s13, %s2120_s12  ;;  %p46_p10 = scmp.eq.s32.totalorder %s44_s30, 0 }
  0x16   : > { %p87_p11 = scmp.eq.s32.totalorder %s1676_s19, 1  ;;  %p92_p13 = scmp.ne.s32.totalorder %s2120_s12, %s2116_s11 }
  0x17   : > { %s2244_s3 = scalar_select %p74_p8, %s2124_s13, %s76_s29  }
  0x18   : > { %s2247_s4 = scalar_select %p46_p10, %s2136_s16, %s48_s24  }
  0x19   : > { %p2249_p12 = por %p87_p11, %p86_p9  ;;  %p93_p0 = scmp.eq.s32.totalorder %s1677_s20, 1 }
  0x1a   : > { %p1935_p2 = scmp.lt.s32.totalorder %s2148_s0, 2  ;;  %s113_s6 = sand.u32 1, %s2136_s16  }
  0x1b   : > { %s2647_s5 = scalar_select %p2249_p12, 1, 0 }
  0x1c   : > { %p2258_p3 = por %p93_p0, %p92_p13  ;;  %s1680_s8 = sshll.u32 %s113_s6, 5 }
  0x1d   : > { %s1821_s9 = sshll.u32 %s2672_s23, 9  ;;  %s117_s22 = scalar_lea.vmem [#allocation4], %s1680_s8 }
  0x1e   : > { %s2648_s7 = scalar_select %p2258_p3, 1, 0 }
  0x1f   : > { %s2265_s19 = scalar_lea.hbm %s2642_s1, %s1821_s9  ;;  %s131_s20 = sshll.u32 %s117_s22, 4  ;;  %s2273_s20 = int_to_ptr.vmem [resolvable:$true] %s131_s20 }
  0x20   : > { %p2269_p4 = pnand %p1935_p2, %p2228_p6  ;;  %s114_s23 = scalar_lea.sflag [#allocation5], %s113_s6 }
  0x21   : > { %s2012_s25 = scalar_lea.hbm %s2265_s19, 512  ;;  %s2017_s29 = scalar_lea.hbm %s2642_s1, 1024 }
  0x22   : > { %p2013_p9 = scmp.ne.s32.totalorder %s2265_s19, %s2012_s25  ;;  %p2014_p10 = pneg %p2269_p4 }
  0x23   : > { %p2018_p6 = scmp.lt.u32.totalorder %s2265_s19, %s2642_s1  ;;  %p2019_p0 = scmp.lt.u32.totalorder %s2017_s29, %s2012_s25 }
  0x24   : > { %p2015_p11 = pnand %p2014_p10, %p2013_p9  ;;  %p2021_p1 = scmp.lt.u32.totalorder %s2012_s25, %s2265_s19 }
  0x25   : > { %p2020_p2 = por %p2019_p0, %p2018_p6 }
  0x26   : > { %p2016_p13 = pneg %p2015_p11 }
  0x27   : > { %p2022_p5 = por %p2021_p1, %p2020_p2 }
  0x29   : > { %p2023_p8 = pnand %p2022_p5, %p2016_p13 }
  0x2b   : > { %2026 = shalt.err (!%p2023_p8)
}
  0x2c   : > { %s2027_s6 = scalar_lea.vmem %s2273_s20, 512  ;;  %s2150_s9 = smov [#allocation4]  }
  0x2d   : > { %p2028_p9 = scmp.ne.s32.totalorder %s2273_s20, %s2027_s6  ;;  %s2032_s10 = sshll.u32 %s2150_s9, 4  ;;  %s2033_s10 = int_to_ptr.vmem [resolvable:$false] %s2032_s10 }
  0x2e   : > { %s2034_s14 = scalar_lea.vmem %s2033_s10, 1024  ;;  %p2035_p12 = scmp.lt.s32.totalorder %s2273_s20, %s2033_s10 }
  0x2f   : > { %p2030_p11 = pnand %p2028_p9, %p2014_p10  ;;  %p2036_p6 = scmp.lt.s32.totalorder %s2034_s14, %s2027_s6 }
  0x31   : > { %p2031_p3 = pneg %p2030_p11  ;;  %p2037_p0 = por %p2036_p6, %p2035_p12 }
  0x33   : > { %p2038_p1 = pnand %p2037_p0, %p2031_p3 }
  0x35   : > { %2041 = shalt.err (!%p2038_p1)
}
  0x36   : > { %1930 = dma.hbm_to_vmem [thread:$0]  (!%p2269_p4), %s2265_s19, 512, %s2273_s20, %s114_s23  }
  0x37   : > { %p2650_p5 = scmp.lt.s32.totalorder %s2148_s0, 3  ;;  %p2651_p8 = scmp.ge.s32.totalorder %s2148_s0, 1 }
  0x39   : > { %p137_p10 = pnand %p2651_p8, %p2650_p5 }
  0x3a   : > { %s142_s22 = sand.u32 (!%p137_p10), 1, %s2132_s15  }
  0x3b   : > { %140 = sbr.rel (%p137_p10) target bundleno = 411 (0x19b), region = 24  ;;  %s1684_s25 = sshll.u32 (!%p137_p10), %s142_s22, 5 }
  0x3c   : > { %s143_s26 = scalar_lea.sflag (!%p137_p10), [#allocation5], %s142_s22  ;;  %s2307_s28 = scalar_lea.vmem (!%p137_p10), [#allocation4], %s1684_s25 }
  0x42   : > { %2107 = dma.done.wait (%p2232_p7), %s143_s26, 512  }
  0x43   : > { %2109 = vsyncadd (%p2232_p7), %s143_s26, 4294966784  ;;  %s162_s24 = sand.u32 1, %s2120_s12   ;;  %s171_s19 = sld [smem:[#allocation3]] }
  0x44   : > { %s1685_s20 = sshll.u32 %s162_s24, 5 }
  0x45   : > { %s2316_s23 = scalar_lea.vmem [#allocation7], %s1685_s20 }
  0x49   : > { %p1686_p12 = scmp.ne.s32.totalorder %s171_s19, 0 }
  0x4a   : > { %v176_v0 = vld [vmem:[%s2307_s28] sm:$0xff] (!%p1686_p12)  ;;  %v177_v1 = vld [vmem:[%s2307_s28 + $0x8] sm:$0xff] (!%p1686_p12)  ;;  %v178_v2 = vld [vmem:[%s2307_s28 + $0x10] sm:$0xff] (!%p1686_p12) }
  0x4b   : > { %175 = sbr.rel (%p1686_p12) target bundleno = 82 (0x52), region = 32  ;;  %180 = vst [vmem:[%s2316_s23] sm:$0xff] (!%p1686_p12), %v176_v0  ;;  %181 = vst [vmem:[%s2316_s23 + $0x8] sm:$0xff] (!%p1686_p12), %v177_v1  ;;  %v179_v3 = vld [vmem:[%s2307_s28 + $0x18] sm:$0xff] (!%p1686_p12) }
  0x4c   : > { %182 = vst [vmem:[%s2316_s23 + $0x10] sm:$0xff] (!%p1686_p12), %v178_v2  ;;  %183 = vst [vmem:[%s2316_s23 + $0x18] sm:$0xff] (!%p1686_p12), %v179_v3 }
  0x52 PF: > { %s184_s27 = sld [smem:[#allocation3]] }
  0x58   : > { %p1687_p7 = scmp.eq.s32.totalorder %s184_s27, 0 }
  0x59   : > { %v190_v4 = vld [vmem:[%s2307_s28 + $0x8] sm:$0xff] (!%p1687_p7)  ;;  %v193_v5 = vlaneseq (!%p1687_p7)  ;;  %v2328_v6 = vld [vmem:[%s2307_s28] sm:$0xff] (!%p1687_p7)  ;;  %v2151_v7 = vmov (!%p1687_p7), 0.0   ;;  %v2332_v8 = vld [vmem:[%s2307_s28 + $0x18] sm:$0xff] (!%p1687_p7)  ;;  %v2152_v29 = vmov (!%p1687_p7), 1.0|1.0  }
  0x5a   : > { %188 = sbr.rel (%p1687_p7) target bundleno = 386 (0x182), region = 36  ;;  %1287 = vmatprep.subr.mxu0 (!%p1687_p7), %v2151_v7  ;;  %1351 = vmatprep.mubr.f32.mxu0 (!%p1687_p7), %v190_v4  ;;  %v2153_v32 = vmov (!%p1687_p7), 0.0|0.0  }
  0x5b   : > { %1288 = vmatpush1.msra.mxu0 (!%p1687_p7), %v2151_v7  ;;  %v2335_v9 = vshrl.u32 (!%p1687_p7), %v193_v5, 7  ;;  %v2337_v10 = vand.u32 (!%p1687_p7), 127, %v193_v5  ;;  %1493 = vmatprep.mubr.f32.mxu1 (!%p1687_p7), %v190_v4 }
  0x5c   : > { %1352 = vmatmul.mubr.f32.vlgmr.msra.gmra.mrb[0].mxu0 (!%p1687_p7), %v2328_v6 }
  0x5d   : > { %v226_v11 = vadd.s32 (!%p1687_p7), 256, %v2335_v9  ;;  %v227_v12 = vadd.s32 (!%p1687_p7), 264, %v2335_v9  ;;  %v2343_v13 = vadd.s32 (!%p1687_p7), 128, %v2337_v10  ;;  %v195_v14 = vadd.s32 (!%p1687_p7), 8, %v2335_v9  ;;  %1422 = vmatprep.mubr.f32.mxu0 (!%p1687_p7), %v2332_v8 }
  0x5e   : > { %v2348_v15 = vadd.s32 (!%p1687_p7), 384, %v2337_v10  ;;  %v228_v16 = vadd.s32 (!%p1687_p7), 272, %v2335_v9  ;;  %v229_v17 = vadd.s32 (!%p1687_p7), 280, %v2335_v9  ;;  %v196_v18 = vadd.s32 (!%p1687_p7), 16, %v2335_v9 }
  0x5f   : > { %v392_v19 = vadd.s32 (!%p1687_p7), %v2343_v13, %v226_v11  ;;  %v396_v20 = vadd.s32 (!%p1687_p7), %v2343_v13, %v227_v12  ;;  %v197_v21 = vadd.s32 (!%p1687_p7), 24, %v2335_v9  ;;  %v230_v22 = vadd.s32 (!%p1687_p7), 288, %v2335_v9 }
  0x60   : > { %v266_v23 = vadd.s32 (!%p1687_p7), %v2348_v15, %v2335_v9  ;;  %v270_v24 = vadd.s32 (!%p1687_p7), %v2348_v15, %v195_v14  ;;  %v400_v25 = vadd.s32 (!%p1687_p7), %v2343_v13, %v228_v16  ;;  %v404_v26 = vadd.s32 (!%p1687_p7), %v2343_v13, %v229_v17 }
  0x61   : > { %vm648_vm0 = vcmp.eq.s32.totalorder %v392_v19, 511  ;;  %vm652_vm1 = vcmp.eq.s32.totalorder %v396_v20, 511  ;;  %v274_v27 = vadd.s32 %v2348_v15, %v196_v18  ;;  %v278_v28 = vadd.s32 %v2348_v15, %v197_v21 }
  0x62   : > { %vm1823_vm2 = vmpackc.low %vm652_vm1, %vm648_vm0  ;;  %vm522_vm3 = vcmp.eq.s32.totalorder %v266_v23, 511  ;;  %vm526_vm4 = vcmp.eq.s32.totalorder %v270_v24, 511  ;;  %vm656_vm5 = vcmp.eq.s32.totalorder %v400_v25, 511  ;;  %vm660_vm6 = vcmp.eq.s32.totalorder %v404_v26, 511 }
  0x63   : > { %1824 = vmatprep.subr.msk.bf16.mxu0 %vm1823_vm2, %v2152_v29  ;;  %vm1871_vm7 = vmpackc.low %vm526_vm4, %vm522_vm3  ;;  %vm530_vm8 = vcmp.eq.s32.totalorder %v274_v27, 511  ;;  %vm534_vm9 = vcmp.eq.s32.totalorder %v278_v28, 511  ;;  %v231_v30 = vadd.s32 296, %v2335_v9  ;;  %v408_v31 = vadd.s32 %v2343_v13, %v230_v22 }
  0x64   : > { %1872 = vmatprep.subr.msk.bf16.mxu1 %vm1871_vm7, %v2152_v29  ;;  %1825 = vmatpush1.bf16.msra.mxu0 %v2153_v32  ;;  %vm1826_vm10 = vmpackc.low %vm660_vm6, %vm656_vm5  ;;  %v198_v33 = vadd.s32 32, %v2335_v9  ;;  %v199_v34 = vadd.s32 40, %v2335_v9  ;;  %v232_v35 = vadd.s32 304, %v2335_v9  ;;  %v233_v36 = vadd.s32 312, %v2335_v9 }
  0x65   : > { %1873 = vmatpush1.bf16.msra.mxu1 %v2153_v32  ;;  %1827 = vmatprep.subr.msk.bf16.mxu0 %vm1826_vm10, %v2152_v29  ;;  %vm1874_vm11 = vmpackc.low %vm534_vm9, %vm530_vm8  ;;  %v412_v37 = vadd.s32 %v2343_v13, %v231_v30  ;;  %vm664_vm12 = vcmp.eq.s32.totalorder %v408_v31, 511  ;;  %v200_v38 = vadd.s32 48, %v2335_v9  ;;  %v201_v39 = vadd.s32 56, %v2335_v9 }
  0x66   : > { %1875 = vmatprep.subr.msk.bf16.mxu1 %vm1874_vm11, %v2152_v29  ;;  %v282_v40 = vadd.s32 %v2348_v15, %v198_v33  ;;  %v286_v41 = vadd.s32 %v2348_v15, %v199_v34  ;;  %v416_v42 = vadd.s32 %v2343_v13, %v232_v35  ;;  %v420_v43 = vadd.s32 %v2343_v13, %v233_v36 }
  0x67   : > { %vm668_vm13 = vcmp.eq.s32.totalorder %v412_v37, 511  ;;  %v290_v44 = vadd.s32 %v2348_v15, %v200_v38  ;;  %v294_v45 = vadd.s32 %v2348_v15, %v201_v39  ;;  %v234_v46 = vadd.s32 320, %v2335_v9 }
  0x68   : > { %1828 = vmatpush1.bf16.msra.mxu0 %v2153_v32  ;;  %vm1829_vm14 = vmpackc.low %vm668_vm13, %vm664_vm12  ;;  %vm538_vm15 = vcmp.eq.s32.totalorder %v282_v40, 511  ;;  %vm542_vm0 = vcmp.eq.s32.totalorder %v286_v41, 511  ;;  %vm672_vm1 = vcmp.eq.s32.totalorder %v416_v42, 511  ;;  %vm676_vm2 = vcmp.eq.s32.totalorder %v420_v43, 511 }
  0x69   : > { %1876 = vmatpush1.bf16.msra.mxu1 %v2153_v32  ;;  %1830 = vmatprep.subr.msk.bf16.mxu0 %vm1829_vm14, %v2152_v29  ;;  %vm1877_vm3 = vmpackc.low %vm542_vm0, %vm538_vm15  ;;  %vm546_vm4 = vcmp.eq.s32.totalorder %v290_v44, 511  ;;  %vm550_vm5 = vcmp.eq.s32.totalorder %v294_v45, 511  ;;  %v235_v47 = vadd.s32 328, %v2335_v9  ;;  %v424_v48 = vadd.s32 %v2343_v13, %v234_v46 }
  0x6a   : > { %1878 = vmatprep.subr.msk.bf16.mxu1 %vm1877_vm3, %v2152_v29  ;;  %vm2392_vm6 = vmpackc.low %vm676_vm2, %vm672_vm1  ;;  %v202_v50 = vadd.s32 64, %v2335_v9  ;;  %v203_v51 = vadd.s32 72, %v2335_v9  ;;  %v236_v52 = vadd.s32 336, %v2335_v9  ;;  %v237_v53 = vadd.s32 344, %v2335_v9 }
  0x6b   : > { %vm2400_vm7 = vmpackc.low %vm550_vm5, %vm546_vm4  ;;  %v428_v55 = vadd.s32 %v2343_v13, %v235_v47  ;;  %vm680_vm8 = vcmp.eq.s32.totalorder %v424_v48, 511  ;;  %v204_v56 = vadd.s32 80, %v2335_v9  ;;  %v205_v57 = vadd.s32 88, %v2335_v9 }
  0x6c   : > { %1831 = vmatpush1.bf16.msra.mxu0 %v2153_v32  ;;  %v298_v58 = vadd.s32 %v2348_v15, %v202_v50  ;;  %v302_v59 = vadd.s32 %v2348_v15, %v203_v51  ;;  %v432_v60 = vadd.s32 %v2343_v13, %v236_v52  ;;  %v436_v61 = vadd.s32 %v2343_v13, %v237_v53 }
  0x6d   : > { %1879 = vmatpush1.bf16.msra.mxu1 %v2153_v32  ;;  %1833 = vmatprep.subr.msk.bf16.mxu0 %vm2392_vm6, %v2152_v29  ;;  %vm684_vm9 = vcmp.eq.s32.totalorder %v428_v55, 511  ;;  %v306_v62 = vadd.s32 %v2348_v15, %v204_v56  ;;  %v310_v63 = vadd.s32 %v2348_v15, %v205_v57  ;;  %v238_v0 = vadd.s32 352, %v2335_v9 }
  0x6e   : > { %1881 = vmatprep.subr.msk.bf16.mxu1 %vm2400_vm7, %v2152_v29  ;;  %vm2423_vm10 = vmpackc.low %vm684_vm9, %vm680_vm8  ;;  %vm554_vm11 = vcmp.eq.s32.totalorder %v298_v58, 511  ;;  %vm558_vm12 = vcmp.eq.s32.totalorder %v302_v59, 511  ;;  %vm688_vm13 = vcmp.eq.s32.totalorder %v432_v60, 511  ;;  %vm692_vm14 = vcmp.eq.s32.totalorder %v436_v61, 511 }
  0x6f   : > { %vm1883_vm15 = vmpackc.low %vm558_vm12, %vm554_vm11  ;;  %vm562_vm0 = vcmp.eq.s32.totalorder %v306_v62, 511  ;;  %vm566_vm1 = vcmp.eq.s32.totalorder %v310_v63, 511  ;;  %v239_v2 = vadd.s32 360, %v2335_v9  ;;  %v440_v3 = vadd.s32 %v2343_v13, %v238_v0 }
  0x70   : > { %1834 = vmatpush1.bf16.msra.mxu0 %v2153_v32  ;;  %v206_v4 = vadd.s32 96, %v2335_v9  ;;  %v207_v5 = vadd.s32 104, %v2335_v9  ;;  %v240_v11 = vadd.s32 368, %v2335_v9  ;;  %v241_v12 = vadd.s32 376, %v2335_v9  ;;  %vm1838_vm2 = vmpackc.low %vm692_vm14, %vm688_vm13 }
  0x71   : > { %1882 = vmatpush1.bf16.msra.mxu1 %v2153_v32  ;;  %1836 = vmatprep.subr.msk.bf16.mxu0 %vm2423_vm10, %v2152_v29  ;;  %v444_v14 = vadd.s32 %v2343_v13, %v239_v2  ;;  %v208_v16 = vadd.s32 112, %v2335_v9  ;;  %v209_v17 = vadd.s32 120, %v2335_v9  ;;  %vm1886_vm3 = vmpackc.low %vm566_vm1, %vm562_vm0  ;;  %vm696_vm4 = vcmp.eq.s32.totalorder %v440_v3, 511 }
  0x72   : > { %1884 = vmatprep.subr.msk.bf16.mxu1 %vm1883_vm15, %v2152_v29  ;;  %v314_v18 = vadd.s32 %v2348_v15, %v206_v4  ;;  %v318_v19 = vadd.s32 %v2348_v15, %v207_v5  ;;  %v448_v20 = vadd.s32 %v2343_v13, %v240_v11  ;;  %v452_v21 = vadd.s32 %v2343_v13, %v241_v12 }
  0x73   : > { %vm700_vm5 = vcmp.eq.s32.totalorder %v444_v14, 511  ;;  %v322_v22 = vadd.s32 %v2348_v15, %v208_v16  ;;  %v326_v23 = vadd.s32 %v2348_v15, %v209_v17  ;;  %v242_v24 = vadd.s32 384, %v2335_v9 }
  0x74   : > { %1837 = vmatpush1.bf16.msra.mxu0 %v2153_v32  ;;  %vm570_vm6 = vcmp.eq.s32.totalorder %v314_v18, 511  ;;  %vm574_vm7 = vcmp.eq.s32.totalorder %v318_v19, 511  ;;  %vm1841_vm8 = vmpackc.low %vm700_vm5, %vm696_vm4  ;;  %vm704_vm9 = vcmp.eq.s32.totalorder %v448_v20, 511  ;;  %v243_v13 = vadd.s32 392, %v2335_v9 }
  0x75   : > { %1885 = vmatpush1.bf16.msra.mxu1 %v2153_v32  ;;  %1839 = vmatprep.subr.msk.bf16.mxu0 %vm1838_vm2, %v2152_v29  ;;  %vm1889_vm10 = vmpackc.low %vm574_vm7, %vm570_vm6  ;;  %vm708_vm11 = vcmp.eq.s32.totalorder %v452_v21, 511  ;;  %v210_v25 = vadd.s32 128, %v2335_v9  ;;  %v211_v26 = vadd.s32 136, %v2335_v9  ;;  %v2461_v15 = vadd.s32 256, %v2337_v10 }
  0x76   : > { %1887 = vmatprep.subr.msk.bf16.mxu1 %vm1886_vm3, %v2152_v29  ;;  %vm578_vm12 = vcmp.eq.s32.totalorder %v322_v22, 511  ;;  %vm582_vm13 = vcmp.eq.s32.totalorder %v326_v23, 511  ;;  %v455_v27 = vadd.s32 %v2337_v10, %v242_v24  ;;  %v244_v28 = vadd.s32 400, %v2335_v9  ;;  %vm1844_vm14 = vmpackc.low %vm708_vm11, %vm704_vm9 }
  0x77   : > { %v459_v30 = vadd.s32 %v2337_v10, %v243_v13  ;;  %v245_v31 = vadd.s32 408, %v2335_v9  ;;  %v212_v33 = vadd.s32 144, %v2335_v9  ;;  %vm1892_vm15 = vmpackc.low %vm582_vm13, %vm578_vm12  ;;  %v329_v34 = vadd.s32 %v2461_v15, %v210_v25 }
  0x78   : > { %1840 = vmatpush1.bf16.msra.mxu0 %v2153_v32  ;;  %v333_v35 = vadd.s32 %v2461_v15, %v211_v26  ;;  %v213_v36 = vadd.s32 152, %v2335_v9  ;;  %vm711_vm0 = vcmp.eq.s32.totalorder %v455_v27, 511  ;;  %v463_v37 = vadd.s32 %v2337_v10, %v244_v28 }
  0x79   : > { %1888 = vmatpush1.bf16.msra.mxu1 %v2153_v32  ;;  %1842 = vmatprep.subr.msk.bf16.mxu0 %vm1841_vm8, %v2152_v29  ;;  %v246_v38 = vadd.s32 416, %v2335_v9  ;;  %v247_v39 = vadd.s32 424, %v2335_v9  ;;  %vm715_vm1 = vcmp.eq.s32.totalorder %v459_v30, 511  ;;  %v467_v40 = vadd.s32 %v2337_v10, %v245_v31 }
  0x7a   : > { %1890 = vmatprep.subr.msk.bf16.mxu1 %vm1889_vm10, %v2152_v29  ;;  %v337_v41 = vadd.s32 %v2461_v15, %v212_v33  ;;  %v214_v42 = vadd.s32 160, %v2335_v9  ;;  %vm585_vm2 = vcmp.eq.s32.totalorder %v329_v34, 511  ;;  %vm589_vm3 = vcmp.eq.s32.totalorder %v333_v35, 511  ;;  %vm1848_vm4 = vmpackc.low %vm715_vm1, %vm711_vm0 }
  0x7b   : > { %v341_v43 = vadd.s32 %v2461_v15, %v213_v36  ;;  %v215_v44 = vadd.s32 168, %v2335_v9  ;;  %v471_v45 = vadd.s32 %v2337_v10, %v246_v38  ;;  %v475_v46 = vadd.s32 %v2337_v10, %v247_v39  ;;  %vm1896_vm5 = vmpackc.low %vm589_vm3, %vm585_vm2 }
  0x7c   : > { %1843 = vmatpush1.bf16.msra.mxu0 %v2153_v32  ;;  %v248_v47 = vadd.s32 432, %v2335_v9  ;;  %v249_v48 = vadd.s32 440, %v2335_v9  ;;  %vm719_vm6 = vcmp.eq.s32.totalorder %v463_v37, 511  ;;  %vm723_vm7 = vcmp.eq.s32.totalorder %v467_v40, 511 }
  0x7d   : > { %1891 = vmatpush1.bf16.msra.mxu1 %v2153_v32  ;;  %1845 = vmatprep.subr.msk.bf16.mxu0 %vm1844_vm14, %v2152_v29  ;;  %v345_v49 = vadd.s32 %v2461_v15, %v214_v42  ;;  %v216_v50 = vadd.s32 176, %v2335_v9  ;;  %vm593_vm8 = vcmp.eq.s32.totalorder %v337_v41, 511  ;;  %vm597_vm9 = vcmp.eq.s32.totalorder %v341_v43, 511  ;;  %vm1851_vm10 = vmpackc.low %vm723_vm7, %vm719_vm6 }
  0x7e   : > { %1893 = vmatprep.subr.msk.bf16.mxu1 %vm1892_vm15, %v2152_v29  ;;  %v349_v51 = vadd.s32 %v2461_v15, %v215_v44  ;;  %v217_v52 = vadd.s32 184, %v2335_v9  ;;  %vm727_vm11 = vcmp.eq.s32.totalorder %v471_v45, 511  ;;  %vm731_vm12 = vcmp.eq.s32.totalorder %v475_v46, 511  ;;  %vm1899_vm13 = vmpackc.low %vm597_vm9, %vm593_vm8 }
  0x7f   : > { %v479_v53 = vadd.s32 %v2337_v10, %v248_v47  ;;  %v483_v54 = vadd.s32 %v2337_v10, %v249_v48  ;;  %vm601_vm14 = vcmp.eq.s32.totalorder %v345_v49, 511  ;;  %v353_v55 = vadd.s32 %v2461_v15, %v216_v50  ;;  %vm1854_vm0 = vmpackc.low %vm731_vm12, %vm727_vm11 }
  0x80   : > { %1846 = vmatpush1.bf16.msra.mxu0 %v2153_v32  ;;  %v250_v56 = vadd.s32 448, %v2335_v9  ;;  %v251_v57 = vadd.s32 456, %v2335_v9  ;;  %vm605_vm15 = vcmp.eq.s32.totalorder %v349_v51, 511  ;;  %v357_v58 = vadd.s32 %v2461_v15, %v217_v52 }
  0x81   : > { %1894 = vmatpush1.bf16.msra.mxu1 %v2153_v32  ;;  %1847 = vmatprep.subr.bf16.mxu0 %v2153_v32  ;;  %v218_v59 = vadd.s32 192, %v2335_v9  ;;  %v219_v60 = vadd.s32 200, %v2335_v9  ;;  %vm735_vm1 = vcmp.eq.s32.totalorder %v479_v53, 511  ;;  %v252_v61 = vadd.s32 464, %v2335_v9  ;;  %vm1902_vm2 = vmpackc.low %vm605_vm15, %vm601_vm14 }
  0x82   : > { %1895 = vmatprep.subr.bf16.mxu1 %v2153_v32  ;;  %v253_v62 = vadd.s32 472, %v2335_v9  ;;  %v220_v63 = vadd.s32 208, %v2335_v9  ;;  %vm739_vm3 = vcmp.eq.s32.totalorder %v483_v54, 511  ;;  %v487_v0 = vadd.s32 %v2337_v10, %v250_v56 }
  0x83   : > { %v491_v1 = vadd.s32 %v2337_v10, %v251_v57  ;;  %v221_v2 = vadd.s32 216, %v2335_v9  ;;  %v361_v3 = vadd.s32 %v2461_v15, %v218_v59  ;;  %v365_v4 = vadd.s32 %v2461_v15, %v219_v60  ;;  %vm1857_vm6 = vmpackc.low %vm739_vm3, %vm735_vm1 }
  0x84   : > { %1849 = vmatpush1.bf16.msk.msra.mxu0 %vm1848_vm4, %v2152_v29  ;;  %vm609_vm4 = vcmp.eq.s32.totalorder %v353_v55, 511  ;;  %v495_v5 = vadd.s32 %v2337_v10, %v252_v61  ;;  %v499_v11 = vadd.s32 %v2337_v10, %v253_v62  ;;  %v369_v12 = vadd.s32 %v2461_v15, %v220_v63 }
  0x85   : > { %1897 = vmatpush1.bf16.msk.msra.mxu1 %vm1896_vm5, %v2152_v29  ;;  %1850 = vmatprep.subr.bf16.mxu0 %v2153_v32  ;;  %vm613_vm5 = vcmp.eq.s32.totalorder %v357_v58, 511  ;;  %v254_v14 = vadd.s32 480, %v2335_v9  ;;  %vm743_vm8 = vcmp.eq.s32.totalorder %v487_v0, 511  ;;  %vm747_vm9 = vcmp.eq.s32.totalorder %v491_v1, 511 }
  0x86   : > { %1898 = vmatprep.subr.bf16.mxu1 %v2153_v32  ;;  %vm1905_vm7 = vmpackc.low %vm613_vm5, %vm609_vm4  ;;  %v373_v16 = vadd.s32 %v2461_v15, %v221_v2  ;;  %v255_v17 = vadd.s32 488, %v2335_v9  ;;  %vm621_vm11 = vcmp.eq.s32.totalorder %v365_v4, 511  ;;  %v222_v18 = vadd.s32 224, %v2335_v9 }
  0x87   : > { %v223_v19 = vadd.s32 232, %v2335_v9  ;;  %vm1860_vm12 = vmpackc.low %vm747_vm9, %vm743_vm8  ;;  %vm755_vm14 = vcmp.eq.s32.totalorder %v499_v11, 511  ;;  %vm625_vm15 = vcmp.eq.s32.totalorder %v369_v12, 511  ;;  %v503_v20 = vadd.s32 %v2337_v10, %v254_v14 }
  0x88   : > { %1852 = vmatpush1.bf16.msk.msra.mxu0 %vm1851_vm10, %v2152_v29  ;;  %vm617_vm10 = vcmp.eq.s32.totalorder %v361_v3, 511  ;;  %vm629_vm1 = vcmp.eq.s32.totalorder %v373_v16, 511  ;;  %v507_v21 = vadd.s32 %v2337_v10, %v255_v17  ;;  %v256_v22 = vadd.s32 496, %v2335_v9 }
  0x89   : > { %1900 = vmatpush1.bf16.msk.msra.mxu1 %vm1899_vm13, %v2152_v29  ;;  %1853 = vmatprep.subr.bf16.mxu0 %v2153_v32  ;;  %vm751_vm13 = vcmp.eq.s32.totalorder %v495_v5, 511  ;;  %v257_v23 = vadd.s32 504, %v2335_v9  ;;  %v377_v24 = vadd.s32 %v2461_v15, %v222_v18  ;;  %v381_v13 = vadd.s32 %v2461_v15, %v223_v19  ;;  %vm1911_vm3 = vmpackc.low %vm629_vm1, %vm625_vm15 }
  0x8a   : > { %1901 = vmatprep.subr.bf16.mxu1 %v2153_v32  ;;  %v224_v25 = vadd.s32 240, %v2335_v9  ;;  %v225_v26 = vadd.s32 248, %v2335_v9  ;;  %vm759_vm4 = vcmp.eq.s32.totalorder %v503_v20, 511  ;;  %vm763_vm5 = vcmp.eq.s32.totalorder %v507_v21, 511 }
  0x8b   : > { %v511_v27 = vadd.s32 %v2337_v10, %v256_v22  ;;  %v515_v28 = vadd.s32 %v2337_v10, %v257_v23  ;;  %vm1866_vm8 = vmpackc.low %vm763_vm5, %vm759_vm4  ;;  %v191_v10 = vld [vmem:[%s2307_s28 + $0x10] sm:$0xff] }
  0x8c   : > { %1855 = vmatpush1.bf16.msk.msra.mxu0 %vm1854_vm0, %v2152_v29  ;;  %vm1908_vm0 = vmpackc.low %vm621_vm11, %vm617_vm10  ;;  %v385_v9 = vadd.s32 %v2461_v15, %v224_v25  ;;  %v389_v30 = vadd.s32 %v2461_v15, %v225_v26 }
  0x8d   : > { %1903 = vmatpush1.bf16.msk.msra.mxu1 %vm1902_vm2, %v2152_v29  ;;  %1856 = vmatprep.subr.bf16.mxu0 %v2153_v32  ;;  %vm1863_vm2 = vmpackc.low %vm755_vm14, %vm751_vm13  ;;  %vm767_vm10 = vcmp.eq.s32.totalorder %v511_v27, 511  ;;  %vm771_vm11 = vcmp.eq.s32.totalorder %v515_v28, 511 }
  0x8e   : > { %1904 = vmatprep.subr.bf16.mxu1 %v2153_v32  ;;  %vm645_vm13 = vcmp.eq.s32.totalorder %v389_v30, 511  ;;  %vm1869_vm14 = vmpackc.low %vm771_vm11, %vm767_vm10 }
  0x90   : > { %1858 = vmatpush1.bf16.msk.msra.mxu0 %vm1857_vm6, %v2152_v29  ;;  %vm633_vm6 = vcmp.eq.s32.totalorder %v377_v24, 511 }
  0x91   : > { %1906 = vmatpush1.bf16.msk.msra.mxu1 %vm1905_vm7, %v2152_v29  ;;  %1859 = vmatprep.subr.bf16.mxu0 %v2153_v32  ;;  %vm637_vm7 = vcmp.eq.s32.totalorder %v381_v13, 511 }
  0x92   : > { %1907 = vmatprep.subr.bf16.mxu1 %v2153_v32  ;;  %vm1914_vm9 = vmpackc.low %vm637_vm7, %vm633_vm6 }
  0x94   : > { %1861 = vmatpush1.bf16.msk.msra.mxu0 %vm1860_vm12, %v2152_v29  ;;  %vm641_vm12 = vcmp.eq.s32.totalorder %v385_v9, 511 }
  0x95   : > { %1909 = vmatpush1.bf16.msk.msra.mxu1 %vm1908_vm0, %v2152_v29  ;;  %1862 = vmatprep.subr.bf16.mxu0 %v2153_v32  ;;  %vm1917_vm15 = vmpackc.low %vm645_vm13, %vm641_vm12 }
  0x96   : > { %1910 = vmatprep.subr.bf16.mxu1 %v2153_v32 }
  0x98   : > { %1864 = vmatpush1.bf16.msk.msra.mxu0 %vm1863_vm2, %v2152_v29 }
  0x99   : > { %1912 = vmatpush1.bf16.msk.msra.mxu1 %vm1911_vm3, %v2152_v29  ;;  %1865 = vmatprep.subr.bf16.mxu0 %v2153_v32 }
  0x9a   : > { %1913 = vmatprep.subr.bf16.mxu1 %v2153_v32 }
  0x9c   : > { %1867 = vmatpush1.bf16.msk.msra.mxu0 %vm1866_vm8, %v2152_v29 }
  0x9d   : > { %1915 = vmatpush1.bf16.msk.msra.mxu1 %vm1914_vm9, %v2152_v29  ;;  %1868 = vmatprep.subr.bf16.mxu0 %v2153_v32 }
  0x9e   : > { %1916 = vmatprep.subr.bf16.mxu1 %v2153_v32 }
  0xa0   : > { %1870 = vmatpush1.bf16.msk.msra.mxu0 %vm1869_vm14, %v2152_v29 }
  0xa1   : > { %1918 = vmatpush1.bf16.msk.msra.mxu1 %vm1917_vm15, %v2152_v29 }
  0xa2   : > { %1500 = vmatprep.subr.mxu1 %v2151_v7 }
  0xa3   : > { %1423 = vmatmul.mubr.f32.vlgmr.msra.gmra.mrb[0].mxu0 %v191_v10 }
  0xa4   : > { %1494 = vmatmul.mubr.f32.vlgmr.msra.gmra.mrb[0].mxu1 %v2328_v6 }
  0xa5   : > { %1501 = vmatpush1.msra.mxu1 %v2151_v7  ;;  %1564 = vmatprep.mubr.f32.mxu1 %v2332_v8 }
  0xac   : > { %1565 = vmatmul.mubr.f32.vlgmr.msra.gmra.mrb[0].mxu1 %v191_v10 }
 0x176   : > { %v1424_v15 = vpop.f32.mrb[0].mxu0 }
 0x177   : > { %1571 = vst [vmem:[%s2316_s23] sm:$0xff] %v1424_v15  ;;  %v1426_v32 = vpop.f32.mrb[1].mxu0 }
 0x178   : > { %1572 = vst [vmem:[%s2316_s23 + $0x8] sm:$0xff] %v1426_v32 }
 0x17f   : > { %v1566_v31 = vpop.f32.mrb[0].mxu1 }
 0x180   : > { %1573 = vst [vmem:[%s2316_s23 + $0x10] sm:$0xff] %v1566_v31  ;;  %v1568_v33 = vpop.f32.mrb[1].mxu1 }
 0x181   : > { %1574 = vst [vmem:[%s2316_s23 + $0x18] sm:$0xff] %v1568_v33 }
 0x182 PF: > { %s1822_s29 = sshll.u32 %s2140_s17, 9  ;;  %s1592_s9 = sshll.u32 %s2316_s23, 4  ;;  %s1593_s9 = int_to_ptr.vmem [resolvable:$true] %s1592_s9 }
 0x183   : > { %s2587_s6 = scalar_lea.hbm %s2643_s2, %s1822_s29  ;;  %s1576_s10 = scalar_lea.sflag [#allocation6], %s162_s24 }
 0x184   : > { %s2042_s14 = scalar_lea.vmem %s1593_s9, 512  ;;  %p2658_p4 = scmp.ne.s32.totalorder %s2647_s5, 0 }
 0x185   : > { %p2043_p3 = scmp.ne.s32.totalorder %s1593_s9, %s2042_s14  ;;  %s2154_s22 = smov [#allocation7]  }
 0x186   : > { %s2046_s25 = sshll.u32 %s2154_s22, 4  ;;  %s2047_s25 = int_to_ptr.vmem [resolvable:$false] %s2046_s25 }
 0x187   : > { %p2044_p13 = pnand %p2043_p3, %p2658_p4  ;;  %s2048_s26 = scalar_lea.vmem %s2047_s25, 1024 }
 0x188   : > { %p2049_p9 = scmp.lt.s32.totalorder %s1593_s9, %s2047_s25  ;;  %p2050_p11 = scmp.lt.s32.totalorder %s2048_s26, %s2042_s14 }
 0x189   : > { %p2045_p2 = pneg %p2044_p13 }
 0x18a   : > { %p2051_p6 = por %p2050_p11, %p2049_p9 }
 0x18c   : > { %p2052_p0 = pnand %p2051_p6, %p2045_p2 }
 0x18e   : > { %2055 = shalt.err (!%p2052_p0)
}
 0x18f   : > { %s2056_s17 = scalar_lea.hbm %s2587_s6, 512  ;;  %s2060_s19 = scalar_lea.hbm %s2643_s2, 1024 }
 0x190   : > { %p2057_p1 = scmp.ne.s32.totalorder %s2587_s6, %s2056_s17  ;;  %p2061_p10 = scmp.lt.u32.totalorder %s2587_s6, %s2643_s2 }
 0x191   : > { %p2062_p12 = scmp.lt.u32.totalorder %s2060_s19, %s2056_s17  ;;  %p2064_p3 = scmp.lt.u32.totalorder %s2056_s17, %s2587_s6 }
 0x192   : > { %p2058_p5 = pnand %p2057_p1, %p2658_p4 }
 0x193   : > { %p2063_p7 = por %p2062_p12, %p2061_p10 }
 0x194   : > { %p2059_p8 = pneg %p2058_p5 }
 0x195   : > { %p2065_p13 = por %p2064_p3, %p2063_p7 }
 0x197   : > { %p2066_p2 = pnand %p2065_p13, %p2059_p8 }
 0x199   : > { %2069 = shalt.err (!%p2066_p2)
}
 0x19a   : > { %1925 = dma.vmem_to_hbm [thread:$0]  (%p2658_p4), %s1593_s9, 512, %s2587_s6, %s1576_s10  }
 0x19b PF: > { %s1604_s27 = sand.u32 1, %s2116_s11   ;;  %p2659_p9 = scmp.ne.s32.totalorder %s2648_s7, 0 }
 0x19c   : > { %p2660_p11 = scmp.ge.s32.totalorder %s2148_s0, 2  ;;  %s1605_s29 = scalar_lea.sflag [#allocation6], %s1604_s27 }
 0x19e   : > { %p1932_p6 = pnand %p2660_p11, %p2659_p9 }
 0x1a0   : > { %2111 = dma.done.wait (!%p1932_p6), %s1605_s29, 512  }
 0x1a1   : > { %2113 = vsyncadd (!%p1932_p6), %s1605_s29, 4294966784  ;;  %s19_s0 = sadd.s32 1, %s2148_s0   ;;  %s2661_s11 = smov %s2120_s12 }
 0x1a2   : > { %p16_p0 = scmp.ge.s32.totalorder %s19_s0, 4   ;;  %s2662_s12 = smov %s2124_s13 }
 0x1a3   : > { %s2663_s13 = smov %s2244_s3  ;;  %s2664_s14 = smov %s2132_s15 }
 0x1a4   : > { %s2665_s15 = smov %s2136_s16  ;;  %s2666_s16 = smov %s2247_s4 }
 0x1a5   : > { %s2667_s17 = smov %s2144_s18  ;;  %s2668_s18 = smov %s2670_s21 }
 0x1a6   :  { %18 = sbr.rel (!%p16_p0) target bundleno = 10 (0xa), region = 77 }
 0x1ad   :  { %1610 = vsyncpa [#allocation5], 1 }
 0x1ae   :  { %1612 = vsyncpa [#allocation5 + $0x1], 1 }
 0x1af   :  { %1613 = vsyncpa [#allocation6], 1 }
 0x1b0   :  { %1615 = vsyncpa [#allocation6 + $0x1], 1 }

</bundles_post_ra>
